<compile_context>
chip_gen: v7x
topology: tpu7x:2x2x1
jax: 0.10.0
libtpu: 0.0.40
codegen_flags: <defaults>
</compile_context>

<pallas_src>
import functools

import jax
import jax.numpy as jnp
from jax import lax
from jax.experimental import pallas as pl
from jax.experimental.pallas import tpu as pltpu

LN_EPS = 1e-5


def _self_attn_kernel(x_ref, gamma_ref, beta_ref, wqkv_ref, wo_ref, bo_ref,
                      out_ref, q_s, k_s, v_s,
                      *, num_heads, cqk, ck, cv, tq, n_valid, n_total):
    qi = pl.program_id(1)
    n_chunks = n_total // tq

    # ---- Once per batch element: LayerNorm + fused Q|K|V projection,
    # chunked over the sequence (bounds the f32 transient to one chunk). ----
    @pl.when(qi == 0)
    def _():
        @pl.loop(0, n_chunks)
        def _(c):
            off = pl.multiple_of(c * tq, tq)
            xc = x_ref[pl.ds(off, tq), :]                          # (tq, C) f32
            mean = jnp.mean(xc, axis=-1, keepdims=True)
            var = jnp.mean((xc - mean) * (xc - mean), axis=-1, keepdims=True)
            xn = (xc - mean) * lax.rsqrt(var + LN_EPS)
            xn = xn * gamma_ref[...] + beta_ref[...]               # f32

            # One wide MXU matmul for Q|K|V of this chunk (bf16 in, f32 acc).
            # Softmax scale is already folded into the Wq columns (host side).
            qkv = jnp.dot(xn.astype(jnp.bfloat16), wqkv_ref[...],
                          preferred_element_type=jnp.float32)      # (tq, 2Cqk+Cv)
            q_bf = qkv[:, :cqk].astype(jnp.bfloat16)
            k_bf = qkv[:, cqk:2 * cqk].astype(jnp.bfloat16)
            v_bf = qkv[:, 2 * cqk:].astype(jnp.bfloat16)

            # Head-split scratch, written chunk-by-chunk.
            for h in range(num_heads):
                q_s[h, pl.ds(off, tq), :] = q_bf[:, h * ck:(h + 1) * ck]
                k_s[h, pl.ds(off, tq), :] = k_bf[:, h * ck:(h + 1) * ck]
                v_s[h, pl.ds(off, tq), :] = v_bf[:, h * cv:(h + 1) * cv]

    # ---- Attention for this query tile, all heads batched ----
    q_start = pl.multiple_of(qi * tq, tq)
    qh = q_s[:, pl.ds(q_start, tq), :]                             # (H, tq, ck) bf16
    kh = k_s[...]                                                  # (H, N,  ck) bf16
    vh = v_s[...]                                                  # (H, N,  cv) bf16

    s = jnp.einsum('hqc,hnc->hqn', qh, kh,
                   preferred_element_type=jnp.float32)             # (H, tq, N) f32
    if n_valid < n_total:                                          # static: mask padded keys
        kidx = lax.broadcasted_iota(jnp.int32, s.shape, 2)
        s = jnp.where(kidx < n_valid, s, -1e30)
    s = s - jnp.max(s, axis=-1, keepdims=True)
    p = jnp.exp(s)
    denom = jnp.sum(p, axis=-1, keepdims=True)
    p = p * (1.0 / denom)                                          # exact; denom is (H,tq,1)

    o = jnp.einsum('hqn,hnc->hqc', p.astype(jnp.bfloat16), vh,
                   preferred_element_type=jnp.float32)             # (H, tq, cv) f32

    # ---- Output projection: single (tq, Cv) x (Cv, Cout) matmul on concat heads ----
    o_cat = jnp.concatenate([o[h] for h in range(num_heads)], axis=-1)  # (tq, Cv)
    out = jnp.dot(o_cat.astype(jnp.bfloat16), wo_ref[...],
                  preferred_element_type=jnp.float32) + bo_ref[...]     # (tq, Cout)
    out_ref[...] = out.astype(out_ref.dtype)


def _vmem_limit_bytes() -> int:
    """~60% of physical VMEM (clamped), so v7x (64 MiB) keeps headroom."""
    limit = 32 * 1024 * 1024
    try:
        cap = int(getattr(pltpu.get_tpu_info(), "vmem_capacity_bytes", 0) or 0)
        if cap > 0:
            limit = max(32 * 1024 * 1024, min(cap * 3 // 5, 96 * 1024 * 1024))
    except Exception:
        pass
    return limit


def self_attention_pallas(x, gamma, beta, wq, wk, wv, wo, bo, num_heads,
                          *, q_tile=128, out_dtype=jnp.float32):
    B, N, C = x.shape
    Cqk = wq.shape[1]
    Cv = wv.shape[1]
    Cout = wo.shape[1]
    assert Cqk % num_heads == 0 and Cv % num_heads == 0
    ck = Cqk // num_heads
    cv = Cv // num_heads
    scale = float(ck) ** (-0.5)

    # Query/projection tile. If q_tile doesn't divide N, pad the sequence and
    # mask the padded keys inside the kernel (no (H,N,N) fallback).
    # (q_tile=256 is a better default on v6e; 128 elsewhere.)
    if N <= q_tile:
        tq, n_pad = N, N
    else:
        tq = q_tile
        n_pad = pl.cdiv(N, tq) * tq
    nq = n_pad // tq

    x_p = x if n_pad == N else jnp.pad(x, ((0, 0), (0, n_pad - N), (0, 0)))

    # Host-side prep: softmax scale folded into Wq; bf16 weights for the MXU
    # (f32 accumulation in-kernel).
    wqkv = jnp.concatenate([wq * scale, wk, wv], axis=1).astype(jnp.bfloat16)
    wo_b = wo.astype(jnp.bfloat16)
    gamma2 = gamma.reshape(1, C).astype(jnp.float32)
    beta2 = beta.reshape(1, C).astype(jnp.float32)
    bo2 = bo.reshape(1, Cout).astype(jnp.float32)

    kernel = functools.partial(
        _self_attn_kernel, num_heads=num_heads, cqk=Cqk, ck=ck, cv=cv,
        tq=tq, n_valid=N, n_total=n_pad)

    out = pl.pallas_call(
        kernel,
        out_shape=jax.ShapeDtypeStruct((B, n_pad, Cout), out_dtype),
        grid=(B, nq),
        in_specs=[
            pl.BlockSpec((pl.Squeezed(), n_pad, C), lambda b, qi: (b, 0, 0)),  # x (full seq)
            pl.BlockSpec((1, C), lambda b, qi: (0, 0)),                        # gamma
            pl.BlockSpec((1, C), lambda b, qi: (0, 0)),                        # beta
            pl.BlockSpec((C, 2 * Cqk + Cv), lambda b, qi: (0, 0)),             # Wq*scale|Wk|Wv
            pl.BlockSpec((Cv, Cout), lambda b, qi: (0, 0)),                    # Wo
            pl.BlockSpec((1, Cout), lambda b, qi: (0, 0)),                     # bo
        ],
        out_specs=pl.BlockSpec((pl.Squeezed(), tq, Cout), lambda b, qi: (b, qi, 0)),
        scratch_shapes=[
            pltpu.VMEM((num_heads, n_pad, ck), jnp.bfloat16),   # Q (scale pre-folded)
            pltpu.VMEM((num_heads, n_pad, ck), jnp.bfloat16),   # K
            pltpu.VMEM((num_heads, n_pad, cv), jnp.bfloat16),   # V
        ],
        compiler_params=pltpu.CompilerParams(
            dimension_semantics=("parallel", "arbitrary"),
            vmem_limit_bytes=_vmem_limit_bytes()),
    )(x_p, gamma2, beta2, wqkv, wo_b, bo2)

    return out if n_pad == N else out[:, :N, :]


def self_attention_ref(x, gamma, beta, wq, wk, wv, wo, bo, num_heads):
    """Pure-JAX f32 reference mirroring the PyTorch forward."""
    B, N, C = x.shape
    mean = jnp.mean(x, axis=-1, keepdims=True)
    var = jnp.mean((x - mean) ** 2, axis=-1, keepdims=True)
    xn = (x - mean) / jnp.sqrt(var + LN_EPS) * gamma + beta
    q = xn @ wq
    k = xn @ wk
    v = xn @ wv
    Cqk, Cv = q.shape[-1], v.shape[-1]
    ck, cv = Cqk // num_heads, Cv // num_heads
    qh = q.reshape(B, N, num_heads, ck).transpose(0, 2, 1, 3)
    kh = k.reshape(B, N, num_heads, ck).transpose(0, 2, 1, 3)
    vh = v.reshape(B, N, num_heads, cv).transpose(0, 2, 1, 3)
    attn = jnp.einsum("bhic,bhjc->bhij", qh, kh) * (ck ** -0.5)
    attn = jax.nn.softmax(attn, axis=-1)
    o = jnp.einsum("bhij,bhjc->bhic", attn, vh)
    o = o.transpose(0, 2, 1, 3).reshape(B, N, Cv)
    return o @ wo + bo


if __name__ == "__main__":
    master = jax.random.PRNGKey(0)

    def run_case(case_id, B, N, C, num_heads, q_tile):
        key = jax.random.fold_in(master, case_id)
        ks = jax.random.split(key, 8)
        x = jax.random.normal(ks[0], (B, N, C), jnp.float32)
        gamma = 1.0 + 0.1 * jax.random.normal(ks[1], (C,), jnp.float32)
        beta = 0.1 * jax.random.normal(ks[2], (C,), jnp.float32)
        # nn.Linear weights stored directly in (in, out) layout.
        wq = jax.random.normal(ks[3], (C, C), jnp.float32) * 0.1
        wk = jax.random.normal(ks[4], (C, C), jnp.float32) * 0.1
        wv = jax.random.normal(ks[5], (C, C), jnp.float32) * 0.1
        wo = jax.random.normal(ks[6], (C, C), jnp.float32) * 0.1
        bo = jax.random.normal(ks[7], (C,), jnp.float32) * 0.1

        out = self_attention_pallas(x, gamma, beta, wq, wk, wv, wo, bo,
                                    num_heads, q_tile=q_tile)
        out = jax.block_until_ready(out)
        ref = self_attention_ref(x, gamma, beta, wq, wk, wv, wo, bo, num_heads)
        assert out.shape == (B, N, C), f"case {case_id}: bad shape {out.shape}"
        # bf16 MXU inputs -> looser tolerance than pure f32.
        assert jnp.allclose(out, ref, atol=2e-2, rtol=2e-2), \
            f"case {case_id}: mismatch vs reference"

    # Case 0: small shapes consistent with the module (B=2, N=8 tokens,
    # C=32 channels, 4 heads); single query tile, no padding.
    run_case(0, B=2, N=8, C=32, num_heads=4, q_tile=128)
    # Case 1: exercises multi-tile grid, chunked QKV projection, sequence
    # padding and in-kernel key masking (N=40 with q_tile=16 -> padded to 48).
    run_case(1, B=2, N=40, C=32, num_heads=4, q_tile=16)

    print("KERNEL_OK")
</pallas_src>

<mosaic_0001>
module attributes {stable_mosaic.version = 11 : i64} {
  func.func @_self_attn_kernel(%arg0: i32, %arg1: i32, %arg2: memref<1x8x32xf32, #tpu.memory_space<vmem>>, %arg3: memref<1x32xf32, #tpu.memory_space<vmem>>, %arg4: memref<1x32xf32, #tpu.memory_space<vmem>>, %arg5: memref<32x96xbf16, #tpu.memory_space<vmem>>, %arg6: memref<32x32xbf16, #tpu.memory_space<vmem>>, %arg7: memref<1x32xf32, #tpu.memory_space<vmem>>, %arg8: memref<1x8x32xf32, #tpu.memory_space<vmem>>, %arg9: memref<4x8x8xbf16, #tpu.memory_space<vmem>>, %arg10: memref<4x8x8xbf16, #tpu.memory_space<vmem>>, %arg11: memref<4x8x8xbf16, #tpu.memory_space<vmem>>) attributes {dimension_semantics = [#tpu.dimension_semantics<parallel>, #tpu.dimension_semantics<arbitrary>], iteration_bounds = array<i64: 2, 1>, scalar_prefetch = 0 : i64, scratch_operands = 3 : i64, tpu.core_type = #tpu.core_type<tc>, window_params = [{transform_indices = @transform_0, window_bounds = array<i64: 1, 8, 32>}, {pipeline_mode = #tpu.pipeline_mode<synchronous>, transform_indices = @transform_1, window_bounds = array<i64: 1, 32>}, {pipeline_mode = #tpu.pipeline_mode<synchronous>, transform_indices = @transform_2, window_bounds = array<i64: 1, 32>}, {pipeline_mode = #tpu.pipeline_mode<synchronous>, transform_indices = @transform_3, window_bounds = array<i64: 32, 96>}, {pipeline_mode = #tpu.pipeline_mode<synchronous>, transform_indices = @transform_4, window_bounds = array<i64: 32, 32>}, {pipeline_mode = #tpu.pipeline_mode<synchronous>, transform_indices = @transform_5, window_bounds = array<i64: 1, 32>}, {transform_indices = @transform_6, window_bounds = array<i64: 1, 8, 32>}]} {
    %c0_i32 = arith.constant 0 : i32
    %0 = arith.cmpi eq, %arg1, %c0_i32 : i32
    %1 = arith.extui %0 : i1 to i32
    %c0_i32_0 = arith.constant 0 : i32
    %2 = arith.cmpi ne, %1, %c0_i32_0 : i32
    scf.if %2 {
      %c0_i32_20 = arith.constant 0 : i32
      %c1_i32 = arith.constant 1 : i32
      %41 = arith.muli %c0_i32_20, %c1_i32 : i32
      %c0_i32_21 = arith.constant 0 : i32
      %42 = arith.addi %c0_i32_21, %41 : i32
      %c8_i32_22 = arith.constant 8 : i32
      %43 = arith.muli %42, %c8_i32_22 : i32
      %44 = tpu.assume_multiple %43, 8 : i32
      %c0_23 = arith.constant 0 : index
      %45 = arith.index_cast %44 : i32 to index
      %c0_24 = arith.constant 0 : index
      %46 = vector.load %arg2[%c0_23, %45, %c0_24] : memref<1x8x32xf32, #tpu.memory_space<vmem>>, vector<1x8x32xf32>
      %47 = vector.shape_cast %46 : vector<1x8x32xf32> to vector<8x32xf32>
      %cst_25 = arith.constant dense<0.000000e+00> : vector<8xf32>
      %48 = vector.multi_reduction <add>, %47, %cst_25 [1] : vector<8x32xf32> to vector<8xf32>
      %49 = vector.shape_cast %48 : vector<8xf32> to vector<8x1xf32>
      %cst_26 = arith.constant 3.200000e+01 : f32
      %50 = vector.broadcast %cst_26 : f32 to vector<8x1xf32>
      %51 = arith.divf %49, %50 : vector<8x1xf32>
      %52 = vector.broadcast %51 : vector<8x1xf32> to vector<8x32xf32>
      %53 = arith.subf %47, %52 : vector<8x32xf32>
      %54 = vector.broadcast %51 : vector<8x1xf32> to vector<8x32xf32>
      %55 = arith.subf %47, %54 : vector<8x32xf32>
      %56 = arith.mulf %53, %55 : vector<8x32xf32>
      %cst_27 = arith.constant dense<0.000000e+00> : vector<8xf32>
      %57 = vector.multi_reduction <add>, %56, %cst_27 [1] : vector<8x32xf32> to vector<8xf32>
      %58 = vector.shape_cast %57 : vector<8xf32> to vector<8x1xf32>
      %cst_28 = arith.constant 3.200000e+01 : f32
      %59 = vector.broadcast %cst_28 : f32 to vector<8x1xf32>
      %60 = arith.divf %58, %59 : vector<8x1xf32>
      %61 = vector.broadcast %51 : vector<8x1xf32> to vector<8x32xf32>
      %62 = arith.subf %47, %61 : vector<8x32xf32>
      %cst_29 = arith.constant 9.99999974E-6 : f32
      %63 = vector.broadcast %cst_29 : f32 to vector<8x1xf32>
      %64 = arith.addf %60, %63 : vector<8x1xf32>
      %65 = math.rsqrt %64 : vector<8x1xf32>
      %66 = vector.broadcast %65 : vector<8x1xf32> to vector<8x32xf32>
      %67 = arith.mulf %62, %66 : vector<8x32xf32>
      %c0_30 = arith.constant 0 : index
      %c0_31 = arith.constant 0 : index
      %68 = vector.load %arg3[%c0_30, %c0_31] : memref<1x32xf32, #tpu.memory_space<vmem>>, vector<1x32xf32>
      %69 = vector.broadcast %68 : vector<1x32xf32> to vector<8x32xf32>
      %70 = arith.mulf %67, %69 : vector<8x32xf32>
      %c0_32 = arith.constant 0 : index
      %c0_33 = arith.constant 0 : index
      %71 = vector.load %arg4[%c0_32, %c0_33] : memref<1x32xf32, #tpu.memory_space<vmem>>, vector<1x32xf32>
      %72 = vector.broadcast %71 : vector<1x32xf32> to vector<8x32xf32>
      %73 = arith.addf %70, %72 : vector<8x32xf32>
      %74 = arith.truncf %73 : vector<8x32xf32> to vector<8x32xbf16>
      %c0_34 = arith.constant 0 : index
      %c0_35 = arith.constant 0 : index
      %75 = vector.load %arg5[%c0_34, %c0_35] : memref<32x96xbf16, #tpu.memory_space<vmem>>, vector<32x96xbf16>
      %cst_36 = arith.constant dense<0.000000e+00> : vector<8x96xf32>
      %76 = tpu.matmul %74, %75, %cst_36 {dimension_numbers = #tpu.dot_dimension_numbers<[1], [0], [0], [1], [0, 0, 1, 1], [], []>} : vector<8x32xbf16>, vector<32x96xbf16>, vector<8x96xf32> -> vector<8x96xf32>
      %77 = vector.extract_strided_slice %76 {offsets = [0, 0], sizes = [8, 32], strides = [1, 1]} : vector<8x96xf32> to vector<8x32xf32>
      %78 = arith.truncf %77 : vector<8x32xf32> to vector<8x32xbf16>
      %79 = vector.extract_strided_slice %76 {offsets = [0, 32], sizes = [8, 32], strides = [1, 1]} : vector<8x96xf32> to vector<8x32xf32>
      %80 = arith.truncf %79 : vector<8x32xf32> to vector<8x32xbf16>
      %81 = vector.extract_strided_slice %76 {offsets = [0, 64], sizes = [8, 32], strides = [1, 1]} : vector<8x96xf32> to vector<8x32xf32>
      %82 = arith.truncf %81 : vector<8x32xf32> to vector<8x32xbf16>
      %83 = vector.extract_strided_slice %78 {offsets = [0, 0], sizes = [8, 8], strides = [1, 1]} : vector<8x32xbf16> to vector<8x8xbf16>
      %c0_37 = arith.constant 0 : index
      %84 = arith.index_cast %44 : i32 to index
      %c0_38 = arith.constant 0 : index
      %85 = vector.load %arg9[%c0_37, %84, %c0_38] : memref<4x8x8xbf16, #tpu.memory_space<vmem>>, vector<1x8x8xbf16>
      %86 = vector.shape_cast %85 : vector<1x8x8xbf16> to vector<8x8xbf16>
      %87 = vector.shape_cast %83 : vector<8x8xbf16> to vector<1x8x8xbf16>
      tpu.vector_store %arg9[%c0_37, %84, %c0_38], %87 {strides = array<i32>} : memref<4x8x8xbf16, #tpu.memory_space<vmem>>, vector<1x8x8xbf16>,
      %88 = vector.extract_strided_slice %80 {offsets = [0, 0], sizes = [8, 8], strides = [1, 1]} : vector<8x32xbf16> to vector<8x8xbf16>
      %c0_39 = arith.constant 0 : index
      %89 = arith.index_cast %44 : i32 to index
      %c0_40 = arith.constant 0 : index
      %90 = vector.load %arg10[%c0_39, %89, %c0_40] : memref<4x8x8xbf16, #tpu.memory_space<vmem>>, vector<1x8x8xbf16>
      %91 = vector.shape_cast %90 : vector<1x8x8xbf16> to vector<8x8xbf16>
      %92 = vector.shape_cast %88 : vector<8x8xbf16> to vector<1x8x8xbf16>
      tpu.vector_store %arg10[%c0_39, %89, %c0_40], %92 {strides = array<i32>} : memref<4x8x8xbf16, #tpu.memory_space<vmem>>, vector<1x8x8xbf16>,
      %93 = vector.extract_strided_slice %82 {offsets = [0, 0], sizes = [8, 8], strides = [1, 1]} : vector<8x32xbf16> to vector<8x8xbf16>
      %c0_41 = arith.constant 0 : index
      %94 = arith.index_cast %44 : i32 to index
      %c0_42 = arith.constant 0 : index
      %95 = vector.load %arg11[%c0_41, %94, %c0_42] : memref<4x8x8xbf16, #tpu.memory_space<vmem>>, vector<1x8x8xbf16>
      %96 = vector.shape_cast %95 : vector<1x8x8xbf16> to vector<8x8xbf16>
      %97 = vector.shape_cast %93 : vector<8x8xbf16> to vector<1x8x8xbf16>
      tpu.vector_store %arg11[%c0_41, %94, %c0_42], %97 {strides = array<i32>} : memref<4x8x8xbf16, #tpu.memory_space<vmem>>, vector<1x8x8xbf16>,
      %98 = vector.extract_strided_slice %78 {offsets = [0, 8], sizes = [8, 8], strides = [1, 1]} : vector<8x32xbf16> to vector<8x8xbf16>
      %c1 = arith.constant 1 : index
      %99 = arith.index_cast %44 : i32 to index
      %c0_43 = arith.constant 0 : index
      %100 = vector.load %arg9[%c1, %99, %c0_43] : memref<4x8x8xbf16, #tpu.memory_space<vmem>>, vector<1x8x8xbf16>
      %101 = vector.shape_cast %100 : vector<1x8x8xbf16> to vector<8x8xbf16>
      %102 = vector.shape_cast %98 : vector<8x8xbf16> to vector<1x8x8xbf16>
      tpu.vector_store %arg9[%c1, %99, %c0_43], %102 {strides = array<i32>} : memref<4x8x8xbf16, #tpu.memory_space<vmem>>, vector<1x8x8xbf16>,
      %103 = vector.extract_strided_slice %80 {offsets = [0, 8], sizes = [8, 8], strides = [1, 1]} : vector<8x32xbf16> to vector<8x8xbf16>
      %c1_44 = arith.constant 1 : index
      %104 = arith.index_cast %44 : i32 to index
      %c0_45 = arith.constant 0 : index
      %105 = vector.load %arg10[%c1_44, %104, %c0_45] : memref<4x8x8xbf16, #tpu.memory_space<vmem>>, vector<1x8x8xbf16>
      %106 = vector.shape_cast %105 : vector<1x8x8xbf16> to vector<8x8xbf16>
      %107 = vector.shape_cast %103 : vector<8x8xbf16> to vector<1x8x8xbf16>
      tpu.vector_store %arg10[%c1_44, %104, %c0_45], %107 {strides = array<i32>} : memref<4x8x8xbf16, #tpu.memory_space<vmem>>, vector<1x8x8xbf16>,
      %108 = vector.extract_strided_slice %82 {offsets = [0, 8], sizes = [8, 8], strides = [1, 1]} : vector<8x32xbf16> to vector<8x8xbf16>
      %c1_46 = arith.constant 1 : index
      %109 = arith.index_cast %44 : i32 to index
      %c0_47 = arith.constant 0 : index
      %110 = vector.load %arg11[%c1_46, %109, %c0_47] : memref<4x8x8xbf16, #tpu.memory_space<vmem>>, vector<1x8x8xbf16>
      %111 = vector.shape_cast %110 : vector<1x8x8xbf16> to vector<8x8xbf16>
      %112 = vector.shape_cast %108 : vector<8x8xbf16> to vector<1x8x8xbf16>
      tpu.vector_store %arg11[%c1_46, %109, %c0_47], %112 {strides = array<i32>} : memref<4x8x8xbf16, #tpu.memory_space<vmem>>, vector<1x8x8xbf16>,
      %113 = vector.extract_strided_slice %78 {offsets = [0, 16], sizes = [8, 8], strides = [1, 1]} : vector<8x32xbf16> to vector<8x8xbf16>
      %c2 = arith.constant 2 : index
      %114 = arith.index_cast %44 : i32 to index
      %c0_48 = arith.constant 0 : index
      %115 = vector.load %arg9[%c2, %114, %c0_48] : memref<4x8x8xbf16, #tpu.memory_space<vmem>>, vector<1x8x8xbf16>
      %116 = vector.shape_cast %115 : vector<1x8x8xbf16> to vector<8x8xbf16>
      %117 = vector.shape_cast %113 : vector<8x8xbf16> to vector<1x8x8xbf16>
      tpu.vector_store %arg9[%c2, %114, %c0_48], %117 {strides = array<i32>} : memref<4x8x8xbf16, #tpu.memory_space<vmem>>, vector<1x8x8xbf16>,
      %118 = vector.extract_strided_slice %80 {offsets = [0, 16], sizes = [8, 8], strides = [1, 1]} : vector<8x32xbf16> to vector<8x8xbf16>
      %c2_49 = arith.constant 2 : index
      %119 = arith.index_cast %44 : i32 to index
      %c0_50 = arith.constant 0 : index
      %120 = vector.load %arg10[%c2_49, %119, %c0_50] : memref<4x8x8xbf16, #tpu.memory_space<vmem>>, vector<1x8x8xbf16>
      %121 = vector.shape_cast %120 : vector<1x8x8xbf16> to vector<8x8xbf16>
      %122 = vector.shape_cast %118 : vector<8x8xbf16> to vector<1x8x8xbf16>
      tpu.vector_store %arg10[%c2_49, %119, %c0_50], %122 {strides = array<i32>} : memref<4x8x8xbf16, #tpu.memory_space<vmem>>, vector<1x8x8xbf16>,
      %123 = vector.extract_strided_slice %82 {offsets = [0, 16], sizes = [8, 8], strides = [1, 1]} : vector<8x32xbf16> to vector<8x8xbf16>
      %c2_51 = arith.constant 2 : index
      %124 = arith.index_cast %44 : i32 to index
      %c0_52 = arith.constant 0 : index
      %125 = vector.load %arg11[%c2_51, %124, %c0_52] : memref<4x8x8xbf16, #tpu.memory_space<vmem>>, vector<1x8x8xbf16>
      %126 = vector.shape_cast %125 : vector<1x8x8xbf16> to vector<8x8xbf16>
      %127 = vector.shape_cast %123 : vector<8x8xbf16> to vector<1x8x8xbf16>
      tpu.vector_store %arg11[%c2_51, %124, %c0_52], %127 {strides = array<i32>} : memref<4x8x8xbf16, #tpu.memory_space<vmem>>, vector<1x8x8xbf16>,
      %128 = vector.extract_strided_slice %78 {offsets = [0, 24], sizes = [8, 8], strides = [1, 1]} : vector<8x32xbf16> to vector<8x8xbf16>
      %c3 = arith.constant 3 : index
      %129 = arith.index_cast %44 : i32 to index
      %c0_53 = arith.constant 0 : index
      %130 = vector.load %arg9[%c3, %129, %c0_53] : memref<4x8x8xbf16, #tpu.memory_space<vmem>>, vector<1x8x8xbf16>
      %131 = vector.shape_cast %130 : vector<1x8x8xbf16> to vector<8x8xbf16>
      %132 = vector.shape_cast %128 : vector<8x8xbf16> to vector<1x8x8xbf16>
      tpu.vector_store %arg9[%c3, %129, %c0_53], %132 {strides = array<i32>} : memref<4x8x8xbf16, #tpu.memory_space<vmem>>, vector<1x8x8xbf16>,
      %133 = vector.extract_strided_slice %80 {offsets = [0, 24], sizes = [8, 8], strides = [1, 1]} : vector<8x32xbf16> to vector<8x8xbf16>
      %c3_54 = arith.constant 3 : index
      %134 = arith.index_cast %44 : i32 to index
      %c0_55 = arith.constant 0 : index
      %135 = vector.load %arg10[%c3_54, %134, %c0_55] : memref<4x8x8xbf16, #tpu.memory_space<vmem>>, vector<1x8x8xbf16>
      %136 = vector.shape_cast %135 : vector<1x8x8xbf16> to vector<8x8xbf16>
      %137 = vector.shape_cast %133 : vector<8x8xbf16> to vector<1x8x8xbf16>
      tpu.vector_store %arg10[%c3_54, %134, %c0_55], %137 {strides = array<i32>} : memref<4x8x8xbf16, #tpu.memory_space<vmem>>, vector<1x8x8xbf16>,
      %138 = vector.extract_strided_slice %82 {offsets = [0, 24], sizes = [8, 8], strides = [1, 1]} : vector<8x32xbf16> to vector<8x8xbf16>
      %c3_56 = arith.constant 3 : index
      %139 = arith.index_cast %44 : i32 to index
      %c0_57 = arith.constant 0 : index
      %140 = vector.load %arg11[%c3_56, %139, %c0_57] : memref<4x8x8xbf16, #tpu.memory_space<vmem>>, vector<1x8x8xbf16>
      %141 = vector.shape_cast %140 : vector<1x8x8xbf16> to vector<8x8xbf16>
      %142 = vector.shape_cast %138 : vector<8x8xbf16> to vector<1x8x8xbf16>
      tpu.vector_store %arg11[%c3_56, %139, %c0_57], %142 {strides = array<i32>} : memref<4x8x8xbf16, #tpu.memory_space<vmem>>, vector<1x8x8xbf16>,
      %c1_i32_58 = arith.constant 1 : i32
    } else {
    }
    %c8_i32 = arith.constant 8 : i32
    %3 = arith.muli %arg1, %c8_i32 : i32
    %4 = tpu.assume_multiple %3, 8 : i32
    %c0 = arith.constant 0 : index
    %5 = arith.index_cast %4 : i32 to index
    %c0_1 = arith.constant 0 : index
    %6 = vector.load %arg9[%c0, %5, %c0_1] : memref<4x8x8xbf16, #tpu.memory_space<vmem>>, vector<4x8x8xbf16>
    %c0_2 = arith.constant 0 : index
    %c0_3 = arith.constant 0 : index
    %c0_4 = arith.constant 0 : index
    %7 = vector.load %arg10[%c0_2, %c0_3, %c0_4] : memref<4x8x8xbf16, #tpu.memory_space<vmem>>, vector<4x8x8xbf16>
    %c0_5 = arith.constant 0 : index
    %c0_6 = arith.constant 0 : index
    %c0_7 = arith.constant 0 : index
    %8 = vector.load %arg11[%c0_5, %c0_6, %c0_7] : memref<4x8x8xbf16, #tpu.memory_space<vmem>>, vector<4x8x8xbf16>
    "tpu.trace_start"() <{level = 10 : i32, message = "hqc,hnc->hqn"}> : () -> ()
    %cst = arith.constant dense<0.000000e+00> : vector<4x8x8xf32>
    %9 = tpu.matmul %6, %7, %cst {dimension_numbers = #tpu.dot_dimension_numbers<[2], [2], [1], [1], [0, 0, 0, 1, 1, 1], [0], [0]>} : vector<4x8x8xbf16>, vector<4x8x8xbf16>, vector<4x8x8xf32> -> vector<4x8x8xf32>
    "tpu.trace_stop"() : () -> ()
    %cst_8 = arith.constant dense<0xFF800000> : vector<4x8xf32>
    %10 = vector.multi_reduction <maximumf>, %9, %cst_8 [2] : vector<4x8x8xf32> to vector<4x8xf32>
    %11 = vector.shape_cast %10 : vector<4x8xf32> to vector<4x8x1xf32>
    %12 = vector.broadcast %11 : vector<4x8x1xf32> to vector<4x8x8xf32>
    %13 = arith.subf %9, %12 : vector<4x8x8xf32>
    %14 = math.exp %13 : vector<4x8x8xf32>
    %cst_9 = arith.constant dense<0.000000e+00> : vector<4x8xf32>
    %15 = vector.multi_reduction <add>, %14, %cst_9 [2] : vector<4x8x8xf32> to vector<4x8xf32>
    %16 = vector.shape_cast %15 : vector<4x8xf32> to vector<4x8x1xf32>
    %cst_10 = arith.constant 1.000000e+00 : f32
    %17 = vector.broadcast %cst_10 : f32 to vector<4x8x1xf32>
    %18 = arith.divf %17, %16 : vector<4x8x1xf32>
    %19 = vector.broadcast %18 : vector<4x8x1xf32> to vector<4x8x8xf32>
    %20 = arith.mulf %14, %19 : vector<4x8x8xf32>
    %21 = arith.truncf %20 : vector<4x8x8xf32> to vector<4x8x8xbf16>
    "tpu.trace_start"() <{level = 10 : i32, message = "hqn,hnc->hqc"}> : () -> ()
    %cst_11 = arith.constant dense<0.000000e+00> : vector<4x8x8xf32>
    %22 = tpu.matmul %21, %8, %cst_11 {dimension_numbers = #tpu.dot_dimension_numbers<[2], [1], [1], [2], [0, 0, 0, 1, 1, 2], [0], [0]>} : vector<4x8x8xbf16>, vector<4x8x8xbf16>, vector<4x8x8xf32> -> vector<4x8x8xf32>
    "tpu.trace_stop"() : () -> ()
    %23 = vector.extract_strided_slice %22 {offsets = [0, 0, 0], sizes = [1, 8, 8], strides = [1, 1, 1]} : vector<4x8x8xf32> to vector<1x8x8xf32>
    %24 = vector.shape_cast %23 : vector<1x8x8xf32> to vector<8x8xf32>
    %25 = vector.extract_strided_slice %22 {offsets = [1, 0, 0], sizes = [1, 8, 8], strides = [1, 1, 1]} : vector<4x8x8xf32> to vector<1x8x8xf32>
    %26 = vector.shape_cast %25 : vector<1x8x8xf32> to vector<8x8xf32>
    %27 = vector.extract_strided_slice %22 {offsets = [2, 0, 0], sizes = [1, 8, 8], strides = [1, 1, 1]} : vector<4x8x8xf32> to vector<1x8x8xf32>
    %28 = vector.shape_cast %27 : vector<1x8x8xf32> to vector<8x8xf32>
    %29 = vector.extract_strided_slice %22 {offsets = [3, 0, 0], sizes = [1, 8, 8], strides = [1, 1, 1]} : vector<4x8x8xf32> to vector<1x8x8xf32>
    %30 = vector.shape_cast %29 : vector<1x8x8xf32> to vector<8x8xf32>
    %31 = tpu.concatenate %24, %26, %28, %30 in 1 : vector<8x8xf32>, vector<8x8xf32>, vector<8x8xf32>, vector<8x8xf32> -> vector<8x32xf32>
    %32 = arith.truncf %31 : vector<8x32xf32> to vector<8x32xbf16>
    %c0_12 = arith.constant 0 : index
    %c0_13 = arith.constant 0 : index
    %33 = vector.load %arg6[%c0_12, %c0_13] : memref<32x32xbf16, #tpu.memory_space<vmem>>, vector<32x32xbf16>
    %cst_14 = arith.constant dense<0.000000e+00> : vector<8x32xf32>
    %34 = tpu.matmul %32, %33, %cst_14 {dimension_numbers = #tpu.dot_dimension_numbers<[1], [0], [0], [1], [0, 0, 1, 1], [], []>} : vector<8x32xbf16>, vector<32x32xbf16>, vector<8x32xf32> -> vector<8x32xf32>
    %c0_15 = arith.constant 0 : index
    %c0_16 = arith.constant 0 : index
    %35 = vector.load %arg7[%c0_15, %c0_16] : memref<1x32xf32, #tpu.memory_space<vmem>>, vector<1x32xf32>
    %36 = vector.broadcast %35 : vector<1x32xf32> to vector<8x32xf32>
    %37 = arith.addf %34, %36 : vector<8x32xf32>
    %c0_17 = arith.constant 0 : index
    %c0_18 = arith.constant 0 : index
    %c0_19 = arith.constant 0 : index
    %38 = vector.load %arg8[%c0_17, %c0_18, %c0_19] : memref<1x8x32xf32, #tpu.memory_space<vmem>>, vector<1x8x32xf32>
    %39 = vector.shape_cast %38 : vector<1x8x32xf32> to vector<8x32xf32>
    %40 = vector.shape_cast %37 : vector<8x32xf32> to vector<1x8x32xf32>
    tpu.vector_store %arg8[%c0_17, %c0_18, %c0_19], %40 {strides = array<i32>} : memref<1x8x32xf32, #tpu.memory_space<vmem>>, vector<1x8x32xf32>,
    return
  }
  func.func @transform_0(%arg0: i32, %arg1: i32) -> (i32, i32, i32) {
    %c0_i32 = arith.constant 0 : i32
    %c0_i32_0 = arith.constant 0 : i32
    %c0_i32_1 = arith.constant 0 : i32
    return %arg0, %c0_i32, %c0_i32_0 : i32, i32, i32
  }
  func.func @transform_1(%arg0: i32, %arg1: i32) -> (i32, i32) {
    %c0_i32 = arith.constant 0 : i32
    %c0_i32_0 = arith.constant 0 : i32
    %c0_i32_1 = arith.constant 0 : i32
    return %c0_i32, %c0_i32_0 : i32, i32
  }
  func.func @transform_2(%arg0: i32, %arg1: i32) -> (i32, i32) {
    %c0_i32 = arith.constant 0 : i32
    %c0_i32_0 = arith.constant 0 : i32
    %c0_i32_1 = arith.constant 0 : i32
    return %c0_i32, %c0_i32_0 : i32, i32
  }
  func.func @transform_3(%arg0: i32, %arg1: i32) -> (i32, i32) {
    %c0_i32 = arith.constant 0 : i32
    %c0_i32_0 = arith.constant 0 : i32
    %c0_i32_1 = arith.constant 0 : i32
    return %c0_i32, %c0_i32_0 : i32, i32
  }
  func.func @transform_4(%arg0: i32, %arg1: i32) -> (i32, i32) {
    %c0_i32 = arith.constant 0 : i32
    %c0_i32_0 = arith.constant 0 : i32
    %c0_i32_1 = arith.constant 0 : i32
    return %c0_i32, %c0_i32_0 : i32, i32
  }
  func.func @transform_5(%arg0: i32, %arg1: i32) -> (i32, i32) {
    %c0_i32 = arith.constant 0 : i32
    %c0_i32_0 = arith.constant 0 : i32
    %c0_i32_1 = arith.constant 0 : i32
    return %c0_i32, %c0_i32_0 : i32, i32
  }
  func.func @transform_6(%arg0: i32, %arg1: i32) -> (i32, i32, i32) {
    %c0_i32 = arith.constant 0 : i32
    %c0_i32_0 = arith.constant 0 : i32
    return %arg0, %arg1, %c0_i32 : i32, i32, i32
  }
}

</mosaic_0001>

<bundles_post_ra>
// kernel: tpu_custom_call.1
= control target key start
LH: loop header
LB: loop body
LE: loop exit
PB: predicated region body
PF: predicated region fallthrough
CT: control target
= control target key end

     0   :  { %11 = vsyncpa [#allocation6], 0  ;;  %s1954_s0 = inlined_call_operand.hbm [shape: f32[2,8,32], index: 0, kind: input, shape index: {}]   ;;  %s1955_s1 = inlined_call_operand.vmem [shape: f32[1,32], index: 1, kind: input, shape index: {}]   ;;  %s1956_s2 = inlined_call_operand.vmem [shape: f32[1,32], index: 2, kind: input, shape index: {}]   ;;  %s1957_s3 = inlined_call_operand.hbm [shape: bf16[32,96], index: 3, kind: input, shape index: {}]   ;;  %s1958_s4 = inlined_call_operand.hbm [shape: bf16[32,32], index: 4, kind: input, shape index: {}]   ;;  %s1959_s5 = inlined_call_operand.vmem [shape: f32[1,32], index: 5, kind: input, shape index: {}]   ;;  %s1960_s6 = inlined_call_operand.hbm [shape: f32[2,8,32], index: 6, kind: output, shape index: {}]  }
   0x1   :  { %13 = vsyncpa [#allocation6 + $0x1], 0 }
   0x2   :  { %14 = vsyncpa [#allocation9], 0 }
   0x3   :  { %15 = vsyncpa [#allocation7], 0 }
   0x4   :  { %17 = vsyncpa [#allocation7 + $0x1], 0  ;;  %s1603_s21 = smov 0   ;;  %s1605_s22 = smov 0  }
   0x5   :  { %s1607_s23 = smov 0   ;;  %s1609_s24 = smov 0  }
   0x6   :  { %s1611_s25 = smov 0   ;;  %s1613_s26 = smov 0  }
   0x7 LB: > { %s1127_s27 = sadd.s32 4294967295, %s1544_s26   ;;  %s1128_s28 = sadd.s32 4294967294, %s1544_s26   ;;  %s1544_s26 = sphi %s1613_s26, %s23_s26   ;;  %s1540_s25 = sphi %s1611_s25, %s1985_s25   ;;  %s1536_s24 = sphi %s1609_s24, %s1984_s24   ;;  %s1532_s23 = sphi %s1607_s23, %s1983_s23   ;;  %s1528_s22 = sphi %s1605_s22, %s1982_s22   ;;  %s1524_s21 = sphi %s1603_s21, %s1981_s21  }
   0x8   : > { %p55_p0 = scmp.ne.s32.totalorder %s1528_s22, %s1524_s21  ;;  %p1637_p1 = scmp.eq.s32.totalorder %s1127_s27, 0 }
   0x9   : > { %p1641_p2 = scmp.eq.s32.totalorder %s1127_s27, 1  ;;  %p192_p3 = scmp.eq.s32.totalorder %s1128_s28, 1 }
   0xa   : > { %s1966_s29 = scalar_select %p1637_p1, 1, 0 }
   0xb   : > { %p1647_p4 = por %p1637_p1, %p55_p0  ;;  %p1129_p5 = scmp.ge.s32.totalorder %s1544_s26, 1 }
   0xc   : > { %p1652_p6 = por %p192_p3, %p55_p0  ;;  %p199_p7 = scmp.lt.s32.totalorder %s1544_s26, 3 }
   0xd   : > { %s1968_s7 = scalar_select %p1647_p4, 1, 0 }
   0xe   : > { %s1969_s8 = scalar_select %p1652_p6, 1, 0 }
   0xf   : > { %p1657_p8 = pnand %p1129_p5, %p199_p7  ;;  %s1546_s10 = smov [#allocation8]  }
  0x10   : > { %1970 = sst [smem:[#allocation15_spill]] %s1969_s8  ;;  %s217_s11 = sshll.u32 %s1546_s10, 4  ;;  %s1661_s11 = int_to_ptr.vmem [resolvable:$true] %s217_s11 }
  0x11   : > { %p1261_p9 = pneg %p1657_p8  ;;  %s1547_s13 = smov [#allocation10]  }
  0x12   : > { %s230_s14 = sshll.u32 %s1547_s13, 4  ;;  %s1372_s17 = scalar_lea.hbm %s1957_s3, 256  ;;  %s1672_s14 = int_to_ptr.vmem [resolvable:$true] %s230_s14 }
  0x13   : > { %p1668_p11 = pnand %p1261_p9, %p1637_p1  ;;  %p1373_p12 = scmp.ne.s32.totalorder %s1957_s3, %s1372_s17 }
  0x14   : > { %p1379_p5 = scmp.lt.u32.totalorder %s1372_s17, %s1957_s3 }
  0x15   : > { %p1374_p13 = pneg %p1668_p11 }
  0x17   : > { %p1375_p0 = pnand %p1374_p13, %p1373_p12 }
  0x19   : > { %p1376_p3 = pneg %p1375_p0 }
  0x1b   : > { %p1381_p7 = pnand %p1379_p5, %p1376_p3 }
  0x1d   : > { %1384 = shalt.err (!%p1381_p7)
}
  0x1e   : > { %s1385_s28 = scalar_lea.vmem %s1661_s11, 256  ;;  %p1393_p1 = scmp.lt.s32.totalorder %s1661_s11, %s1661_s11 }
  0x1f   : > { %p1386_p9 = scmp.ne.s32.totalorder %s1661_s11, %s1385_s28  ;;  %p1394_p12 = scmp.lt.s32.totalorder %s1385_s28, %s1385_s28 }
  0x21   : > { %p1388_p10 = pnand %p1386_p9, %p1374_p13  ;;  %p1395_p0 = por %p1394_p12, %p1393_p1 }
  0x23   : > { %p1389_p6 = pneg %p1388_p10 }
  0x25   : > { %p1396_p4 = pnand %p1395_p0, %p1389_p6 }
  0x27   : > { %1399 = shalt.err (!%p1396_p4)
}
  0x28   : > { %s1548_s10 = smov 64   ;;  %s1549_s13 = smov 4  }
  0x29   : > { %1264 = dma.hbm_to_vmem [thread:$0]  (!%p1668_p11), %s1957_s3, 256, %s1661_s11, [#allocation9], %s1548_s10, %s1548_s10, %s1549_s13  }
  0x2a   : > { %s1400_s19 = scalar_lea.hbm %s1958_s4, 256 }
  0x2b   : > { %p1401_p1 = scmp.ne.s32.totalorder %s1958_s4, %s1400_s19  ;;  %p1407_p10 = scmp.lt.u32.totalorder %s1400_s19, %s1958_s4 }
  0x2d   : > { %p1403_p4 = pnand %p1401_p1, %p1374_p13 }
  0x2f   : > { %p1404_p6 = pneg %p1403_p4 }
  0x31   : > { %p1409_p3 = pnand %p1407_p10, %p1404_p6 }
  0x33   : > { %1412 = shalt.err (!%p1409_p3)
}
  0x34   : > { %s1413_s11 = scalar_lea.vmem %s1672_s14, 256  ;;  %p1421_p12 = scmp.lt.s32.totalorder %s1672_s14, %s1672_s14 }
  0x35   : > { %p1414_p5 = scmp.ne.s32.totalorder %s1672_s14, %s1413_s11  ;;  %p1422_p0 = scmp.lt.s32.totalorder %s1413_s11, %s1413_s11 }
  0x37   : > { %p1416_p7 = pnand %p1414_p5, %p1374_p13  ;;  %p1423_p1 = por %p1422_p0, %p1421_p12 }
  0x39   : > { %p1417_p9 = pneg %p1416_p7 }
  0x3b   : > { %p1424_p4 = pnand %p1423_p1, %p1417_p9 }
  0x3d   : > { %1427 = shalt.err (!%p1424_p4)
}
  0x3e   : > { %1267 = dma.hbm_to_vmem [thread:$0]  (!%p1668_p11), %s1958_s4, 256, %s1672_s14, [#allocation9], %s1548_s10, %s1548_s10, %s1549_s13  }
  0x3f   : > { %s35_s16 = sadd.s32 1, %s1540_s25  ;;  %s42_s17 = sadd.s32 1, %s1532_s23 }
  0x40   : > { %p37_p13 = scmp.ge.s32.totalorder %s35_s16, 2  ;;  %p49_p6 = scmp.ne.s32.totalorder %s1532_s23, %s1528_s22 }
  0x41   : > { %p50_p10 = scmp.eq.s32.totalorder %s1544_s26, 0  ;;  %p1278_p3 = scmp.lt.s32.totalorder %s1544_s26, 2 }
  0x42   : > { %s1987_s16 = smov (%p37_p13, %s35_s16), 0  ;;  %p1736_p7 = por %p1641_p2, %p49_p6 }
  0x43   : > { %p51_p5 = por %p50_p10, %p49_p6  ;;  %s39_s18 = ssub.s32 %s1540_s25, %s1987_s16 }
  0x44   : > { %s1973_s12 = scalar_select %p1736_p7, 1, 0 }
  0x45   : > { %s247_s19 = sand.u32 1, %s1532_s23   ;;  %p40_p9 = scmp.eq.s32.totalorder %s39_s18, 0 }
  0x46   : > { %s1133_s14 = sshll.u32 %s247_s19, 3  ;;  %s1134_s10 = sshll.u32 %s1540_s25, 7 }
  0x47   : > { %s1745_s13 = scalar_select %p40_p9, %s1532_s23, %s42_s17  }
  0x48   : > { %s1750_s28 = scalar_lea.hbm %s1954_s0, %s1134_s10  ;;  %s251_s30 = scalar_lea.vmem [#allocation5], %s1133_s14 }
  0x49   : > { %s258_s11 = sshll.u32 %s251_s30, 4  ;;  %p1754_p2 = pnand %p1278_p3, %p51_p5  ;;  %s1758_s11 = int_to_ptr.vmem [resolvable:$true] %s258_s11 }
  0x4a   : > { %s248_s15 = scalar_lea.sflag [#allocation6], %s247_s19  ;;  %s1428_s17 = scalar_lea.hbm %s1750_s28, 128 }
  0x4b   : > { %p1429_p11 = scmp.ne.s32.totalorder %s1750_s28, %s1428_s17  ;;  %p1430_p12 = pneg %p1754_p2 }
  0x4c   : > { %s1433_s10 = scalar_lea.hbm %s1954_s0, 256  ;;  %p1434_p4 = scmp.lt.u32.totalorder %s1750_s28, %s1954_s0 }
  0x4d   : > { %p1431_p0 = pnand %p1430_p12, %p1429_p11  ;;  %p1435_p13 = scmp.lt.u32.totalorder %s1433_s10, %s1428_s17 }
  0x4e   : > { %p1437_p10 = scmp.lt.u32.totalorder %s1428_s17, %s1750_s28 }
  0x4f   : > { %p1432_p1 = pneg %p1431_p0  ;;  %p1436_p6 = por %p1435_p13, %p1434_p4 }
  0x51   : > { %p1438_p3 = por %p1437_p10, %p1436_p6 }
  0x53   : > { %p1439_p5 = pnand %p1438_p3, %p1432_p1 }
  0x55   : > { %1442 = shalt.err (!%p1439_p5)
}
  0x56   : > { %s1443_s19 = scalar_lea.vmem %s1758_s11, 128  ;;  %s1550_s30 = smov [#allocation5]  }
  0x57   : > { %p1444_p9 = scmp.ne.s32.totalorder %s1758_s11, %s1443_s19  ;;  %s1448_s18 = sshll.u32 %s1550_s30, 4  ;;  %s1449_s18 = int_to_ptr.vmem [resolvable:$false] %s1448_s18 }
  0x58   : > { %s1450_s14 = scalar_lea.vmem %s1449_s18, 256  ;;  %p1451_p7 = scmp.lt.s32.totalorder %s1758_s11, %s1449_s18 }
  0x59   : > { %p1446_p11 = pnand %p1444_p9, %p1430_p12  ;;  %p1452_p4 = scmp.lt.s32.totalorder %s1450_s14, %s1443_s19 }
  0x5b   : > { %p1447_p0 = pneg %p1446_p11  ;;  %p1453_p13 = por %p1452_p4, %p1451_p7 }
  0x5d   : > { %p1454_p6 = pnand %p1453_p13, %p1447_p0 }
  0x5f   : > { %1457 = shalt.err (!%p1454_p6)
}
  0x60   : > { %1271 = dma.hbm_to_vmem [thread:$0]  (!%p1754_p2), %s1750_s28, 128, %s1758_s11, %s248_s15  }
  0x61   : > { %267 = sbr.rel (%p1657_p8) target bundleno = 1876 (0x754), region = 44  ;;  %s1788_s17 = sand.u32 (!%p1657_p8), 1, %s1528_s22  }
  0x62   : > { %s1136_s10 = sshll.u32 (!%p1657_p8), %s1788_s17, 3  ;;  %s270_s20 = scalar_lea.sflag (!%p1657_p8), [#allocation6], %s1788_s17 }
  0x63   : > { %s273_s27 = scalar_lea.vmem (!%p1657_p8), [#allocation5], %s1136_s10  ;;  %p1975_p7 = scmp.ne.s32.totalorder (!%p1657_p8), %s1968_s7, 0 }
  0x68   : > { %1511 = dma.done.wait (%p1975_p7), %s270_s20, 128  }
  0x69   : > { %1513 = vsyncadd (%p1975_p7), %s270_s20, 4294967168  ;;  %p1976_p2 = scmp.ne.s32.totalorder %s1966_s29, 0 }
  0x6b   : > { %1515 = dma.done.wait (%p1976_p2), [#allocation9], 512  }
  0x6c   : > { %1517 = vsyncadd (%p1976_p2), [#allocation9], 4294966784  ;;  %vm316_vm0 = vcmask 261120   ;;  %v315_v0 = vld [vmem:[%s273_s27] sm:$0xff]  ;;  %v1350_v7 = vld [vmem:[#allocation8] sm:$0xff]   ;;  %v1551_v8 = vmov 0.0  }
  0x6d   : > { %v317_v1 = vsel %vm316_vm0, %v315_v0, 0.0  ;;  %1185 = vmatprep.subr.bf16.mxu0 %v1551_v8  ;;  %vm1552_vm1 = vmmov 0   ;;  %v1351_v9 = vld [vmem:[#allocation8 + $0x8] sm:$0xff]   ;;  %1193 = vmatprep.subr.bf16.mxu1 %v1551_v8  ;;  %v1140_v14 = vld [vmem:[%s1955_s1] ss:$0 sm:$0xff]  ;;  %vm408_vm2 = vcmask 60416  }
  0x6e   : > { %318 = vadd.xlane.f32.xlu0 %v317_v1  ;;  %1189 = vmatprep.mubr.msk.bf16.mxu0 %vm1552_vm1, %v1551_v8  ;;  %v1141_v16 = vld [vmem:[%s1956_s2] ss:$0 sm:$0xff]  ;;  %s1553_s11 = smov 80   ;;  %s1554_s8 = smov 96   ;;  %vm495_vm3 = vcmask 64512   ;;  %vm735_vm4 = vcmask 1043456  }
  0x6f   : > { %1186 = vmatpush3.bf16.msra.mxu0 %v1350_v7  ;;  %1195 = vmatprep.mubr.msk.bf16.mxu1 %vm1552_vm1, %v1551_v8  ;;  %s1555_s15 = smov 88   ;;  %s1556_s19 = smov 120   ;;  %vm930_vm5 = vcmask 130048   ;;  %vm932_vm6 = vcmask 195584  }
  0x70   : > { %1187 = vmatprep.subr.bf16.mxu0 %v1551_v8  ;;  %s1557_s30 = smov 72   ;;  %s1558_s18 = smov 112  }
  0x71   : > { %s1559_s14 = smov 104   ;;  %s1560_s20 = smov 64  }
  0x72   : > { %s1561_s27 = smov 48   ;;  %s1562_s29 = smov 40  }
  0x73   : > { %1188 = vmatpush3.bf16.msra.mxu0 %v1351_v9  ;;  %s1563_s7 = smov 56   ;;  %s1564_s9 = smov 16  }
  0x74   : > { %1199 = vmatprep.subr.bf16.mxu0 %v1551_v8  ;;  %s1565_s28 = smov 8   ;;  %p1977_p12 = scmp.ne.s32.totalorder %s1973_s12, 0 }
  0xfb   : > { %v319_v2 = vpop.xlane.xlu0 %318 }
  0xfc   : > { %v321_v3 = vmul.f32 0.03125, %v319_v2 }
  0xfe   : > { %v322_v4 = vsub.f32 %v315_v0, %v321_v3 }
 0x100   : > { %v323_v5 = vmul.f32 %v322_v4, %v322_v4 }
 0x102   : > { %v324_v6 = vsel %vm316_vm0, %v323_v5, 0.0 }
 0x103   : > { %325 = vadd.xlane.f32.xlu0 %v324_v6 }
 0x190   : > { %v326_v10 = vpop.xlane.xlu0 %325 }
 0x191   : > { %v327_v11 = vmul.f32 0.03125, %v326_v10 }
 0x193   : > { %v328_v12 = vadd.f32 1e-05, %v327_v11 }
 0x195   : > { %1354 = vrsqrt.f32 %v328_v12 }
 0x19f   : > { %v1355_v13 = vpop.eup %1354 }
 0x1a0   : > { %v330_v15 = vmul.f32 %v1355_v13, %v322_v4 }
 0x1a2   : > { %v338_v17 = vmul.f32 %v1140_v14, %v330_v15 }
 0x1a4   : > { %v346_v18 = vadd.f32 %v1141_v16, %v338_v17 }
 0x1a6   : > { %v347_v19 = vpack.c.bf16 %v346_v18, %v346_v18 }
 0x1a8   : > { %1190 = vmatmul.mubr.msk.bf16.vlgmr.msra.gmra.mrb[0].mxu0 %vm316_vm0, %v347_v19 }
 0x1a9   : > { %1201 = vmatprep.mubr.msk.bf16.mxu0 %vm1552_vm1, %v1551_v8 }
 0x27b   : > { %v401_v20 = vpop.f32.mrb[0].mxu0 }
 0x27c   : > { %v1821_v21 = vpack.c.bf16 %v401_v20, %v401_v20  ;;  %v1191_v22 = vpop.f32.mrb[1].mxu0 }
 0x27d   : > { %v404_v23 = vpop.f32.mrb[2].mxu0 }
 0x27e   : > { %447 = vrot.lane.b32.xlu0 %v1821_v21, %s1553_s11  ;;  %413 = vrot.lane.b32.xlu1 %v1821_v21, %s1554_s8  ;;  %v1192_v24 = vpop.f32.mrb[3].mxu0  ;;  %409 = vst.msk [vmem:[#allocation2] sm:$0xf] %vm408_vm2, %v1821_v21  ;;  %s1566_s11 = smov 24  }
 0x282   : > { %428 = vrot.lane.b32.xlu1 %v1821_v21, %s1555_s15 }
 0x285   : > { %v483_v36 = vld [vmem:[#allocation2] sm:$0xf] }
 0x286   : > { %421 = vrot.lane.b32.xlu1 %v1821_v21, %s1556_s19  ;;  %s1159_s19 = sshll.u32 %s1536_s24, 7  ;;  %s1004_s24 = scalar_lea.sflag [#allocation7], %s1788_s17 }
 0x28a   : > { %466 = vrot.lane.b32.xlu1 %v1821_v21, %s1557_s30  ;;  %s309_s30 = scalar_lea.vmem [#allocation11], %s1136_s10 }
 0x28e   : > { %440 = vrot.lane.b32.xlu1 %v1821_v21, %s1558_s18  ;;  %s1018_s18 = sshll.u32 %s309_s30, 4  ;;  %s1906_s18 = int_to_ptr.vmem [resolvable:$true] %s1018_s18 }
 0x28f   : > { %s1458_s10 = scalar_lea.vmem %s1906_s18, 128 }
 0x290   : > { %p1459_p8 = scmp.ne.s32.totalorder %s1906_s18, %s1458_s10 }
 0x292   : > { %459 = vrot.lane.b32.xlu1 %v1821_v21, %s1559_s14  ;;  %p1460_p1 = pnand %p1459_p8, %p1977_p12 }
 0x294   : > { %p1461_p10 = pneg %p1460_p1 }
 0x2f0   : > { %v448_v25 = vpop.permute.xlu0 %447  ;;  %v414_v26 = vpop.permute.xlu1 %413 }
 0x2f1   : > { %452 = vst.msk [vmem:[#allocation3 + $0x8] sm:$0xf] %vm408_vm2, %v448_v25  ;;  %416 = vst.msk [vmem:[#allocation3] sm:$0xf] %vm408_vm2, %v414_v26 }
 0x2f4   : > { %v429_v27 = vpop.permute.xlu1 %428 }
 0x2f5   : > { %433 = vst.msk [vmem:[#allocation3 + $0x4] sm:$0xf] %vm408_vm2, %v429_v27 }
 0x2f8   : > { %v422_v28 = vpop.permute.xlu1 %421  ;;  %v487_v29 = vld [vmem:[#allocation3] sm:$0xf]  ;;  %v489_v34 = vld [vmem:[#allocation3 + $0x8] sm:$0xf] }
 0x2f9   : > { %427 = vst.msk [vmem:[#allocation2 + $0x4] sm:$0xf] %vm408_vm2, %v422_v28  ;;  %v500_v30 = vsel %vm495_vm3, %v487_v29, 0  ;;  %v592_v37 = vsel %vm495_vm3, %v489_v34, 0 }
 0x2fa   : > { %1194 = vmatpush3.bf16.xpose.msra.mxu1 %v500_v30 }
 0x2fb   : > { %1205 = vmatprep.subr.bf16.mxu1 %v1551_v8 }
 0x2fc   : > { %v467_v31 = vpop.permute.xlu1 %466  ;;  %v488_v32 = vld [vmem:[#allocation3 + $0x4] sm:$0xf] }
 0x2fd   : > { %471 = vst.msk [vmem:[#allocation3 + $0xc] sm:$0xf] %vm408_vm2, %v467_v31  ;;  %v546_v33 = vsel %vm495_vm3, %v488_v32, 0 }
 0x2fe   : > { %1200 = vmatpush3.bf16.xpose.msra.mxu0 %v546_v33 }
 0x2ff   : > { %1211 = vmatprep.subr.bf16.mxu0 %v1551_v8 }
 0x300   : > { %v441_v35 = vpop.permute.xlu1 %440  ;;  %v484_v39 = vld [vmem:[#allocation2 + $0x4] sm:$0xf] }
 0x301   : > { %446 = vst.msk [vmem:[#allocation2 + $0x8] sm:$0xf] %vm408_vm2, %v441_v35  ;;  %1196 = vmatmul.mubr.msk.bf16.vlgmr.msra.gmra.mrb[0].mxu1 %vm495_vm3, %v483_v36 }
 0x302   : > { %1206 = vmatpush3.bf16.xpose.msra.mxu1 %v592_v37  ;;  %1207 = vmatprep.mubr.msk.bf16.mxu1 %vm1552_vm1, %v1551_v8 }
 0x303   : > { %1217 = vmatprep.subr.bf16.mxu1 %v1551_v8 }
 0x304   : > { %v460_v38 = vpop.permute.xlu1 %459  ;;  %v490_v40 = vld [vmem:[#allocation3 + $0xc] sm:$0xf] }
 0x305   : > { %465 = vst.msk [vmem:[#allocation2 + $0xc] sm:$0xf] %vm408_vm2, %v460_v38  ;;  %1202 = vmatmul.mubr.msk.bf16.vlgmr.msra.gmra.mrb[4].mxu0 %vm495_vm3, %v484_v39  ;;  %v638_v41 = vsel %vm495_vm3, %v490_v40, 0 }
 0x306   : > { %1212 = vmatpush3.bf16.xpose.msra.mxu0 %v638_v41  ;;  %1213 = vmatprep.mubr.msk.bf16.mxu0 %vm1552_vm1, %v1551_v8 }
 0x307   : > { %1223 = vmatprep.subr.bf16.mxu0 %v1551_v8 }
 0x308   : > { %v485_v42 = vld [vmem:[#allocation2 + $0x8] sm:$0xf] }
 0x309   : > { %1208 = vmatmul.mubr.msk.bf16.vlgmr.msra.gmra.mrb[4].mxu1 %vm495_vm3, %v485_v42 }
 0x30a   : > { %1219 = vmatprep.mubr.msk.bf16.mxu1 %vm1552_vm1, %v1551_v8 }
 0x30c   : > { %v486_v43 = vld [vmem:[#allocation2 + $0xc] sm:$0xf] }
 0x30d   : > { %1214 = vmatmul.mubr.msk.bf16.vlgmr.msra.gmra.mrb[8].mxu0 %vm495_vm3, %v486_v43 }
 0x30e   : > { %1225 = vmatprep.mubr.msk.bf16.mxu0 %vm1552_vm1, %v1551_v8 }
 0x3d4   : > { %v536_v44 = vpop.f32.mrb[0].mxu1 }
 0x3d5   : > { %v1197_v45 = vpop.f32.mrb[1].mxu1  ;;  %v680_v46 = vsel %vm495_vm3, %v536_v44, -inf }
 0x3d6   : > { %681 = vmax.xlane.f32.xlu1 %v680_v46  ;;  %v539_v47 = vpop.f32.mrb[2].mxu1 }
 0x3d7   : > { %v1198_v48 = vpop.f32.mrb[3].mxu1 }
 0x3d8   : > { %v582_v49 = vpop.f32.mrb[4].mxu0 }
 0x3d9   : > { %v1203_v50 = vpop.f32.mrb[5].mxu0  ;;  %v683_v51 = vsel %vm495_vm3, %v582_v49, -inf }
 0x3da   : > { %684 = vmax.xlane.f32.xlu0 %v683_v51  ;;  %v585_v52 = vpop.f32.mrb[6].mxu0  ;;  %v1352_v51 = vld [vmem:[#allocation10] sm:$0xff]  }
 0x3db   : > { %v1204_v53 = vpop.f32.mrb[7].mxu0 }
 0x3dc   : > { %v628_v54 = vpop.f32.mrb[4].mxu1 }
 0x3dd   : > { %v1209_v55 = vpop.f32.mrb[5].mxu1  ;;  %v686_v56 = vsel %vm495_vm3, %v628_v54, -inf }
 0x3de   : > { %687 = vmax.xlane.f32.xlu1 %v686_v56  ;;  %v631_v57 = vpop.f32.mrb[6].mxu1 }
 0x3df   : > { %v1210_v58 = vpop.f32.mrb[7].mxu1 }
 0x3e0   : > { %v674_v59 = vpop.f32.mrb[8].mxu0 }
 0x3e1   : > { %v1215_v60 = vpop.f32.mrb[9].mxu0  ;;  %v689_v61 = vsel %vm495_vm3, %v674_v59, -inf }
 0x3e2   : > { %690 = vmax.xlane.f32.xlu0 %v689_v61  ;;  %v677_v62 = vpop.f32.mrb[10].mxu0 }
 0x3e3   : > { %v1216_v63 = vpop.f32.mrb[11].mxu0 }
 0x3ef   : > { %417 = vrot.lane.b32.xlu1 %v1821_v21, %s1560_s20 }
 0x463   : > { %v682_v0 = vpop.xlane.xlu1 %681 }
 0x464   : > { %v692_v1 = vsub.f32 %v536_v44, %v682_v0 }
 0x466   : > { %v696_v2 = vmul.f32 1.442695, %v692_v1 }
 0x467   : > { %v685_v3 = vpop.xlane.xlu0 %684 }
 0x468   : > { %1356 = vpow2.f32 %v696_v2  ;;  %v693_v4 = vsub.f32 %v582_v49, %v685_v3 }
 0x46a   : > { %v698_v5 = vmul.f32 1.442695, %v693_v4 }
 0x46b   : > { %v688_v6 = vpop.xlane.xlu1 %687 }
 0x46c   : > { %1358 = vpow2.f32 %v698_v5  ;;  %v694_v7 = vsub.f32 %v628_v54, %v688_v6  ;;  %v1353_v54 = vld [vmem:[#allocation10 + $0x8] sm:$0xff]  }
 0x46e   : > { %v700_v9 = vmul.f32 1.442695, %v694_v7 }
 0x46f   : > { %v418_v10 = vpop.permute.xlu1 %417  ;;  %v691_v11 = vpop.xlane.xlu0 %690 }
 0x470   : > { %1360 = vpow2.f32 %v700_v9  ;;  %420 = vst.msk [vmem:[#allocation4] sm:$0xf] %vm408_vm2, %v418_v10  ;;  %v695_v12 = vsub.f32 %v674_v59, %v691_v11  ;;  %v1154_v10 = vld [vmem:[%s1959_s5] ss:$0 sm:$0xff] }
 0x472   : > { %v1357_v13 = vpop.eup %1356  ;;  %v702_v14 = vmul.f32 1.442695, %v695_v12 }
 0x473   : > { %v704_v15 = vsel %vm495_vm3, %v1357_v13, 0.0 }
 0x474   : > { %1362 = vpow2.f32 %v702_v14  ;;  %705 = vadd.xlane.f32.xlu1 %v704_v15 }
 0x476   : > { %v1359_v16 = vpop.eup %1358 }
 0x477   : > { %v707_v17 = vsel %vm495_vm3, %v1359_v16, 0.0  ;;  %v491_v18 = vld [vmem:[#allocation4] sm:$0xf] }
 0x478   : > { %708 = vadd.xlane.f32.xlu0 %v707_v17  ;;  %v737_v19 = vsel %vm735_vm4, %v491_v18, 0 }
 0x479   : > { %1218 = vmatpush3.bf16.msra.mxu1 %v737_v19 }
 0x47a   : > { %v1361_v20 = vpop.eup %1360  ;;  %1229 = vmatprep.subr.bf16.mxu1 %v1551_v8 }
 0x47b   : > { %v710_v22 = vsel %vm495_vm3, %v1361_v20, 0.0 }
 0x47c   : > { %711 = vadd.xlane.f32.xlu1 %v710_v22 }
 0x47e   : > { %v1363_v23 = vpop.eup %1362 }
 0x47f   : > { %v713_v24 = vsel %vm495_vm3, %v1363_v23, 0.0 }
 0x480   : > { %714 = vadd.xlane.f32.xlu0 %v713_v24 }
 0x48d   : > { %453 = vrot.lane.b32.xlu1 %v1821_v21, %s1561_s27  ;;  %s1904_s27 = scalar_lea.hbm %s1960_s6, %s1159_s19 }
 0x491   : > { %472 = vrot.lane.b32.xlu1 %v1821_v21, %s1562_s29  ;;  %s1567_s29 = smov [#allocation11]  }
 0x496   : > { %434 = vrot.lane.b32.xlu0 %v1821_v21, %s1563_s7  ;;  %s1462_s7 = sshll.u32 %s1567_s29, 4  ;;  %s1463_s7 = int_to_ptr.vmem [resolvable:$false] %s1462_s7 }
 0x497   : > { %p1465_p3 = scmp.lt.s32.totalorder %s1906_s18, %s1463_s7 }
 0x501   : > { %v706_v25 = vpop.xlane.xlu1 %705 }
 0x502   : > { %1364 = vrcp.f32 %v706_v25 }
 0x505   : > { %v709_v26 = vpop.xlane.xlu0 %708 }
 0x509   : > { %v712_v27 = vpop.xlane.xlu1 %711 }
 0x50a   : > { %1366 = vrcp.f32 %v712_v27 }
 0x50b   : > { %1368 = vrcp.f32 %v709_v26 }
 0x50c   : > { %v1365_v28 = vpop.eup %1364 }
 0x50d   : > { %v724_v29 = vmul.f32 %v1365_v28, %v1357_v13  ;;  %v454_v30 = vpop.permute.xlu1 %453  ;;  %v715_v31 = vpop.xlane.xlu0 %714 }
 0x50e   : > { %458 = vst.msk [vmem:[#allocation4 + $0x8] sm:$0xf] %vm408_vm2, %v454_v30  ;;  %1370 = vrcp.f32 %v715_v31 }
 0x50f   : > { %v728_v32 = vpack.c.bf16 %v724_v29, %v724_v29 }
 0x511   : > { %1220 = vmatmul.mubr.msk.bf16.vlgmr.msra.gmra.mrb[8].mxu1 %vm495_vm3, %v728_v32  ;;  %v473_v33 = vpop.permute.xlu1 %472  ;;  %v435_v34 = vpop.permute.xlu0 %434 }
 0x512   : > { %477 = vst.msk [vmem:[#allocation4 + $0xc] sm:$0xf] %vm408_vm2, %v473_v33  ;;  %439 = vst.msk [vmem:[#allocation4 + $0x4] sm:$0xf] %vm408_vm2, %v435_v34  ;;  %1231 = vmatprep.mubr.msk.bf16.mxu1 %vm1552_vm1, %v1551_v8 }
 0x514   : > { %v1367_v21 = vpop.eup %1366 }
 0x515   : > { %v1369_v35 = vpop.eup %1368  ;;  %v726_v36 = vmul.f32 %v1367_v21, %v1361_v20  ;;  %v493_v37 = vld [vmem:[#allocation4 + $0x8] sm:$0xf] }
 0x516   : > { %v829_v38 = vsel %vm735_vm4, %v493_v37, 0  ;;  %v725_v40 = vmul.f32 %v1369_v35, %v1359_v16 }
 0x517   : > { %1230 = vmatpush3.bf16.msra.mxu1 %v829_v38  ;;  %v730_v39 = vpack.c.bf16 %v726_v36, %v726_v36 }
 0x518   : > { %1241 = vmatprep.subr.bf16.mxu1 %v1551_v8  ;;  %v729_v44 = vpack.c.bf16 %v725_v40, %v725_v40  ;;  %v1371_v45 = vpop.eup %1370 }
 0x519   : > { %v492_v41 = vld [vmem:[#allocation4 + $0x4] sm:$0xf]  ;;  %v494_v43 = vld [vmem:[#allocation4 + $0xc] sm:$0xf]  ;;  %v727_v47 = vmul.f32 %v1371_v45, %v1363_v23 }
 0x51a   : > { %1232 = vmatmul.mubr.msk.bf16.vlgmr.msra.gmra.mrb[12].mxu1 %vm495_vm3, %v730_v39  ;;  %v783_v42 = vsel %vm735_vm4, %v492_v41, 0  ;;  %v875_v46 = vsel %vm735_vm4, %v494_v43, 0 }
 0x51b   : > { %1224 = vmatpush3.bf16.msra.mxu0 %v783_v42  ;;  %1245 = vmatprep.mubr.msk.bf16.mxu1 %vm1552_vm1, %v1551_v8  ;;  %v731_v48 = vpack.c.bf16 %v727_v47, %v727_v47 }
 0x51c   : > { %1235 = vmatprep.subr.bf16.mxu0 %v1551_v8  ;;  %1242 = vmatpush3.bf16.msra.mxu1 %v1352_v51 }
 0x51d   : > { %1243 = vmatprep.subr.bf16.mxu1 %v1551_v8 }
 0x51e   : > { %1226 = vmatmul.mubr.msk.bf16.vlgmr.msra.gmra.mrb[12].mxu0 %vm495_vm3, %v729_v44 }
 0x51f   : > { %1236 = vmatpush3.bf16.msra.mxu0 %v875_v46  ;;  %1237 = vmatprep.mubr.msk.bf16.mxu0 %vm1552_vm1, %v1551_v8 }
 0x520   : > { %1244 = vmatpush3.bf16.msra.mxu1 %v1353_v54 }
 0x526   : > { %1238 = vmatmul.mubr.msk.bf16.vlgmr.msra.gmra.mrb[16].mxu0 %vm495_vm3, %v731_v48 }
 0x5e4   : > { %v773_v49 = vpop.f32.mrb[8].mxu1 }
 0x5e5   : > { %v1221_v50 = vpop.f32.mrb[9].mxu1 }
 0x5e6   : > { %v776_v52 = vpop.f32.mrb[10].mxu1 }
 0x5e7   : > { %v1222_v53 = vpop.f32.mrb[11].mxu1 }
 0x5ed   : > { %v865_v55 = vpop.f32.mrb[12].mxu1 }
 0x5ee   : > { %922 = vrot.lane.b32.xlu1 %v865_v55, %s1564_s9  ;;  %v1233_v56 = vpop.f32.mrb[13].mxu1  ;;  %s1464_s9 = scalar_lea.vmem %s1463_s7, 256 }
 0x5ef   : > { %v868_v57 = vpop.f32.mrb[14].mxu1  ;;  %p1466_p5 = scmp.lt.s32.totalorder %s1464_s9, %s1458_s10 }
 0x5f0   : > { %v1234_v58 = vpop.f32.mrb[15].mxu1 }
 0x5f1   : > { %v819_v59 = vpop.f32.mrb[12].mxu0  ;;  %p1467_p9 = por %p1466_p5, %p1465_p3 }
 0x5f2   : > { %918 = vrot.lane.b32.xlu0 %v819_v59, %s1565_s28  ;;  %v1227_v60 = vpop.f32.mrb[13].mxu0 }
 0x5f3   : > { %v822_v61 = vpop.f32.mrb[14].mxu0  ;;  %p1468_p11 = pnand %p1467_p9, %p1461_p10 }
 0x5f4   : > { %v1228_v62 = vpop.f32.mrb[15].mxu0 }
 0x5f9   : > { %v911_v63 = vpop.f32.mrb[16].mxu0 }
 0x5fa   : > { %926 = vrot.lane.b32.xlu0 %v911_v63, %s1566_s11  ;;  %v1239_v8 = vpop.f32.mrb[17].mxu0 }
 0x5fb   : > { %v914_v0 = vpop.f32.mrb[18].mxu0 }
 0x5fc   : > { %v1240_v1 = vpop.f32.mrb[19].mxu0 }
 0x660   : > { %v923_v4 = vpop.permute.xlu1 %922 }
 0x664   : > { %v919_v2 = vpop.permute.xlu0 %918 }
 0x665   : > { %v929_v3 = vsel %vm495_vm3, %v773_v49, %v919_v2 }
 0x666   : > { %v931_v5 = vsel %vm930_vm5, %v929_v3, %v923_v4 }
 0x66c   : > { %v927_v6 = vpop.permute.xlu0 %926 }
 0x66d   : > { %v933_v7 = vsel %vm932_vm6, %v931_v5, %v927_v6 }
 0x66e   : > { %v934_v9 = vpack.c.bf16 %v933_v7, %v933_v7 }
 0x670   : > { %1246 = vmatmul.mubr.msk.bf16.vlgmr.msra.gmra.mrb[16].mxu1 %vm316_vm0, %v934_v9 }
 0x743   : > { %v996_v11 = vpop.f32.mrb[16].mxu1 }
 0x744   : > { %v997_v12 = vadd.f32 %v1154_v10, %v996_v11  ;;  %v1247_v13 = vpop.f32.mrb[17].mxu1 }
 0x745   : > { %v999_v14 = vpop.f32.mrb[18].mxu1 }
 0x746   : > { %v1248_v15 = vpop.f32.mrb[19].mxu1  ;;  %1002 = vst.msk [vmem:[%s309_s30] sm:$0xff] %vm316_vm0, %v997_v12 }
 0x747   : > { %1471 = shalt.err (!%p1468_p11)
}
 0x748   : > { %s1472_s17 = scalar_lea.hbm %s1904_s27, 128  ;;  %s1476_s8 = scalar_lea.hbm %s1960_s6, 256 }
 0x749   : > { %p1473_p0 = scmp.ne.s32.totalorder %s1904_s27, %s1472_s17  ;;  %p1477_p6 = scmp.lt.u32.totalorder %s1904_s27, %s1960_s6 }
 0x74a   : > { %p1478_p7 = scmp.lt.u32.totalorder %s1476_s8, %s1472_s17  ;;  %p1480_p8 = scmp.lt.u32.totalorder %s1472_s17, %s1904_s27 }
 0x74b   : > { %p1474_p4 = pnand %p1473_p0, %p1977_p12 }
 0x74c   : > { %p1479_p2 = por %p1478_p7, %p1477_p6 }
 0x74d   : > { %p1475_p13 = pneg %p1474_p4 }
 0x74e   : > { %p1481_p1 = por %p1480_p8, %p1479_p2 }
 0x750   : > { %p1482_p10 = pnand %p1481_p1, %p1475_p13 }
 0x752   : > { %1485 = shalt.err (!%p1482_p10)
}
 0x753   : > { %1259 = dma.vmem_to_hbm [thread:$0]  (%p1977_p12), %s1906_s18, 128, %s1904_s27, %s1004_s24  }
 0x754 PF: > { %s1978_s30 = sld [smem:[#allocation15_spill]]  ;;  %s1030_s14 = sand.u32 1, %s1524_s21  }
 0x755   : > { %p1980_p5 = scmp.ge.s32.totalorder %s1544_s26, 2  ;;  %s1031_s20 = scalar_lea.sflag [#allocation7], %s1030_s14 }
 0x75a   : > { %p1979_p3 = scmp.ne.s32.totalorder %s1978_s30, 0 }
 0x75c   : > { %p1273_p9 = pnand %p1980_p5, %p1979_p3 }
 0x75e   : > { %1519 = dma.done.wait (!%p1273_p9), %s1031_s20, 128  }
 0x75f   : > { %1521 = vsyncadd (!%p1273_p9), %s1031_s20, 4294967168  ;;  %s23_s26 = sadd.s32 1, %s1544_s26   ;;  %s1981_s21 = smov %s1528_s22 }
 0x760   : > { %p20_p11 = scmp.ge.s32.totalorder %s23_s26, 4   ;;  %s1982_s22 = smov %s1532_s23 }
 0x761   : > { %s1983_s23 = smov %s1745_s13  ;;  %s1984_s24 = smov %s1540_s25 }
 0x762   : > { %s1985_s25 = smov %s1987_s16  ;;  %22 = sbr.rel (!%p20_p11) target bundleno = 7 (0x7), region = 111 }
 0x769   :  { %1036 = vsyncpa [#allocation6], 1 }
 0x76a   :  { %1038 = vsyncpa [#allocation6 + $0x1], 1 }
 0x76b   :  { %1039 = vsyncpa [#allocation9], 1 }
 0x76c   :  { %1040 = vsyncpa [#allocation7], 1 }
 0x76d   :  { %1042 = vsyncpa [#allocation7 + $0x1], 1 }

</bundles_post_ra>
